<compile_context>
chip_gen: v7x
topology: tpu7x:2x2x1
jax: 0.10.0
libtpu: 0.0.40
codegen_flags: <defaults>
</compile_context>

<pallas_src>
import jax
import jax.numpy as jnp
from jax.experimental import pallas as pl
from jax.experimental.pallas import tpu as pltpu

# ---- model configuration (small shapes consistent with the module) ----------
INPUT_SIZE = 8                 # input feature size
NUM_CHANNELS = [32, 32, 32]    # 3 temporal blocks (module default is [64]*3)
KERNEL_SIZE = 3
FORECAST_STEPS = 1
T = 16                         # sequence length
B = 2                          # batch size
DILATIONS = [2 ** i for i in range(len(NUM_CHANNELS))]   # 1, 2, 4
CH = NUM_CHANNELS[0]                                      # uniform channel width

assert all(c == CH for c in NUM_CHANNELS)
# TODO(synk): FC head is specialized to forecast_steps == 1 (single lane
# reduction); forecast_steps > 1 would need a small (CH, F) matmul instead.
assert FORECAST_STEPS == 1


# ---- Pallas kernel: whole batch, whole network, one invocation ---------------
def tcn_kernel(x_ref, w0_ref, wc_ref, misc_ref, out_ref):
    # x_ref   : (B, T, INPUT_SIZE) f32  -- time on sublanes, channels on lanes
    # w0_ref  : (K*INPUT_SIZE, 2*CH) f32 -- [conv1_0 | downsample_0] fused weight
    #           (downsample weight embedded at the zero-shift tap rows only)
    # wc_ref  : (5, K*CH, CH) f32 -- [conv2_0, conv1_1, conv2_1, conv1_2, conv2_2]
    # misc_ref: (16, CH) f32 -- rows 0..5 conv biases (b1_0,b2_0,b1_1,b2_1,b1_2,b2_2),
    #           row 6 downsample bias, row 7 fc weight (as a row), [8,0] fc bias
    # out_ref : (B, FORECAST_STEPS) f32
    x = x_ref[...]
    Bk, Tk, _ = x.shape

    def stack_taps(act, dilation):
        """(B, T, C) -> (B*T, K*C): K causally shifted copies stacked on lanes.

        Shifts use pltpu.roll (XLU sublane rotate, jnp.roll semantics) and a
        time-index mask to supply the causal zero padding -- no zero-fill /
        concatenate along time, no padded scratch needed.
        """
        _, _, C = act.shape
        t_idx = jax.lax.broadcasted_iota(jnp.int32, act.shape, 1)
        parts = []
        for j in range(KERNEL_SIZE):
            s = (KERNEL_SIZE - 1 - j) * dilation        # causal left shift of tap j
            if s == 0:
                parts.append(act)
            else:
                rolled = pltpu.roll(act, shift=s, axis=1)    # rolled[t] = act[t-s]
                parts.append(jnp.where(t_idx >= s, rolled, 0.0))
        return jnp.concatenate(parts, axis=-1).reshape(Bk * Tk, KERNEL_SIZE * C)

    def conv_relu(act, widx, bidx, dilation):
        """Fused causal dilated conv + bias + ReLU: one (B*T,K*CH)@(K*CH,CH)."""
        y = jnp.dot(stack_taps(act, dilation), wc_ref[widx],
                    preferred_element_type=jnp.float32)
        y = y.reshape(Bk, Tk, CH) + misc_ref[bidx:bidx + 1, :]
        return jnp.maximum(y, 0.0)

    # ---- block 0: conv1 fused with the downsample 1x1 conv -------------------
    y0 = jnp.dot(stack_taps(x, DILATIONS[0]), w0_ref[...],
                 preferred_element_type=jnp.float32)           # (B*T, 2*CH)
    o = jnp.maximum(y0[:, :CH].reshape(Bk, Tk, CH) + misc_ref[0:1, :], 0.0)
    res = y0[:, CH:].reshape(Bk, Tk, CH) + misc_ref[6:7, :]    # downsample path
    o = conv_relu(o, 0, 1, DILATIONS[0])                       # conv2_0
    h = jnp.maximum(o + res, 0.0)                              # residual + ReLU

    # ---- blocks 1.. : identity residual ---------------------------------------
    for blk in range(1, len(NUM_CHANNELS)):
        d = DILATIONS[blk]
        o = conv_relu(h, 2 * blk - 1, 2 * blk, d)              # conv1_blk
        o = conv_relu(o, 2 * blk, 2 * blk + 1, d)              # conv2_blk
        h = jnp.maximum(o + h, 0.0)

    # ---- head: out[:, :, -1] then Linear(CH, 1) as a lane reduction ----------
    h_last = h[:, Tk - 1, :]                                   # (B, CH)
    out_ref[...] = (jnp.sum(h_last * misc_ref[7:8, :], axis=-1, keepdims=True)
                    + misc_ref[8:9, 0:1])


# ---- host-side packing (constants, computed ONCE) -----------------------------
def pack_params(p):
    # Fused block-0 weight: [conv1_0 | downsample_0], shape (K*INPUT_SIZE, 2*CH).
    w1_0 = p["w1_0"].reshape(KERNEL_SIZE * INPUT_SIZE, CH)
    dpad = jnp.zeros((KERNEL_SIZE * INPUT_SIZE, CH), jnp.float32)
    dpad = dpad.at[(KERNEL_SIZE - 1) * INPUT_SIZE:, :].set(p["dw_0"])  # zero-shift tap
    w0f = jnp.concatenate([w1_0, dpad], axis=1)

    wc = jnp.stack([
        p["w2_0"].reshape(KERNEL_SIZE * CH, CH),
        p["w1_1"].reshape(KERNEL_SIZE * CH, CH),
        p["w2_1"].reshape(KERNEL_SIZE * CH, CH),
        p["w1_2"].reshape(KERNEL_SIZE * CH, CH),
        p["w2_2"].reshape(KERNEL_SIZE * CH, CH),
    ], axis=0)                                                  # (5, K*CH, CH)

    misc = jnp.zeros((16, CH), jnp.float32)
    misc = misc.at[0].set(p["b1_0"][0])
    misc = misc.at[1].set(p["b2_0"][0])
    misc = misc.at[2].set(p["b1_1"][0])
    misc = misc.at[3].set(p["b2_1"][0])
    misc = misc.at[4].set(p["b1_2"][0])
    misc = misc.at[5].set(p["db_0"][0] * 0 + p["b1_2"][0] * 0 + p["b2_2"][0])
    misc = misc.at[6].set(p["db_0"][0])
    misc = misc.at[7].set(p["fc_w"][:, 0])                      # FORECAST_STEPS == 1
    misc = misc.at[8, 0].set(p["fc_b"][0, 0])
    return w0f, wc, misc


# ---- jitted forward wrapper ----------------------------------------------------
@jax.jit
def tcn_ecf_forward(x, w0f, wc, misc):
    b = x.shape[0]
    out = pl.pallas_call(
        tcn_kernel,
        out_shape=jax.ShapeDtypeStruct((b, FORECAST_STEPS), jnp.float32),
        in_specs=[pl.BlockSpec(memory_space=pltpu.MemorySpace.VMEM)] * 4,
        out_specs=pl.BlockSpec(memory_space=pltpu.MemorySpace.VMEM),
    )(x, w0f, wc, misc)
    return out[:, 0]                       # forecast_steps == 1 -> squeeze(-1)


# ---- pure-JAX reference (independent per-tap f32 math, no Pallas) --------------
def _causal_conv(act, w, b, dilation):
    """Causal dilated conv1d. act: (T, Cin), w: (K, Cin, Cout), b: (1, Cout)."""
    K_, cin, cout = w.shape
    t = act.shape[0]
    y = jnp.zeros((t, cout), jnp.float32)
    for j in range(K_):
        s = (K_ - 1 - j) * dilation
        if s == 0:
            shifted = act
        elif s >= t:
            continue
        else:
            shifted = jnp.concatenate(
                [jnp.zeros((s, cin), jnp.float32), act[: t - s, :]], axis=0)
        y = y + jnp.dot(shifted, w[j])
    return y + b


def _temporal_block(act, w1, b1, w2, b2, dilation, dw=None, db=None):
    out = jnp.maximum(_causal_conv(act, w1, b1, dilation), 0.0)
    out = jnp.maximum(_causal_conv(out, w2, b2, dilation), 0.0)
    res = act if dw is None else jnp.dot(act, dw) + db
    return jnp.maximum(out + res, 0.0)


def reference_forward(x, p):
    def single(xb):
        h = _temporal_block(xb, p["w1_0"], p["b1_0"], p["w2_0"], p["b2_0"],
                            DILATIONS[0], p["dw_0"], p["db_0"])
        h = _temporal_block(h, p["w1_1"], p["b1_1"], p["w2_1"], p["b2_1"],
                            DILATIONS[1])
        h = _temporal_block(h, p["w1_2"], p["b1_2"], p["w2_2"], p["b2_2"],
                            DILATIONS[2])
        return (jnp.dot(h[-1:, :], p["fc_w"]) + p["fc_b"])[0]
    out = jax.vmap(single)(x)
    return out[:, 0]


# ---- deterministic parameter init (shapes implied by the module __init__) -----
def init_params(key):
    keys = iter(jax.random.split(key, 32))
    p = {}
    in_chs = [INPUT_SIZE] + NUM_CHANNELS[:-1]
    for i, (cin, cout) in enumerate(zip(in_chs, NUM_CHANNELS)):
        # PyTorch Conv1d weight (cout, cin, K) -> stored here as (K, cin, cout)
        p[f"w1_{i}"] = 0.1 * jax.random.normal(next(keys), (KERNEL_SIZE, cin, cout), jnp.float32)
        p[f"b1_{i}"] = 0.1 * jax.random.normal(next(keys), (1, cout), jnp.float32)
        p[f"w2_{i}"] = 0.1 * jax.random.normal(next(keys), (KERNEL_SIZE, cout, cout), jnp.float32)
        p[f"b2_{i}"] = 0.1 * jax.random.normal(next(keys), (1, cout), jnp.float32)
        if cin != cout:  # downsample 1x1 conv (only the first block here)
            p[f"dw_{i}"] = 0.1 * jax.random.normal(next(keys), (cin, cout), jnp.float32)
            p[f"db_{i}"] = 0.1 * jax.random.normal(next(keys), (1, cout), jnp.float32)
    # nn.Linear(C_last, forecast_steps): weight (F, C_last) -> stored as (C_last, F)
    p["fc_w"] = 0.1 * jax.random.normal(next(keys), (NUM_CHANNELS[-1], FORECAST_STEPS), jnp.float32)
    p["fc_b"] = 0.1 * jax.random.normal(next(keys), (1, FORECAST_STEPS), jnp.float32)
    return p


if __name__ == "__main__":
    # x matches the module's expected input (batch, seq_len, input_size); the
    # module's internal permute(0, 2, 1) is absorbed into our (B, T, C) layout.
    key = jax.random.PRNGKey(0)
    kx, kp = jax.random.split(key)
    x = jax.random.normal(kx, (B, T, INPUT_SIZE), jnp.float32)
    params = init_params(kp)

    # Packed weights are constants: built once, outside the per-call path.
    w0f, wc, misc = pack_params(params)

    out = tcn_ecf_forward(x, w0f, wc, misc)
    out = jax.block_until_ready(out)

    ref = reference_forward(x, params)
    assert out.shape == (B,)
    # Storage is f32 throughout; tolerance covers TPU MXU default-precision
    # (bf16-pass) rounding across the 7 chained matmuls.
    assert jnp.allclose(out, ref, atol=5e-2, rtol=5e-2), (out, ref)

    print("KERNEL_OK")
</pallas_src>

<mosaic_0001>
module attributes {stable_mosaic.version = 11 : i64} {
  func.func @tcn_kernel(%arg0: memref<2x16x8xf32, #tpu.memory_space<vmem>>, %arg1: memref<24x64xf32, #tpu.memory_space<vmem>>, %arg2: memref<5x96x32xf32, #tpu.memory_space<vmem>>, %arg3: memref<16x32xf32, #tpu.memory_space<vmem>>, %arg4: memref<2x1xf32, #tpu.memory_space<vmem>>) attributes {dimension_semantics = [], scalar_prefetch = 0 : i64, scratch_operands = 0 : i64, tpu.core_type = #tpu.core_type<tc>} {
    %c0 = arith.constant 0 : index
    %c0_0 = arith.constant 0 : index
    %c0_1 = arith.constant 0 : index
    %0 = vector.load %arg0[%c0, %c0_0, %c0_1] : memref<2x16x8xf32, #tpu.memory_space<vmem>>, vector<2x16x8xf32>
    %1 = tpu.iota {dimensions = array<i32: 1>} : vector<2x16x8xi32>
    %c2_i32 = arith.constant 2 : i32
    %2 = tpu.dynamic_rotate %0 by %c2_i32 dim 1 : vector<2x16x8xf32>, i32 -> vector<2x16x8xf32>
    %c2_i32_2 = arith.constant 2 : i32
    %3 = vector.broadcast %c2_i32_2 : i32 to vector<2x16x8xi32>
    %4 = arith.cmpi sge, %1, %3 : vector<2x16x8xi32>
    %cst = arith.constant 0.000000e+00 : f32
    %5 = vector.broadcast %cst : f32 to vector<2x16x8xf32>
    %6 = arith.select %4, %2, %5 : vector<2x16x8xi1>, vector<2x16x8xf32>
    %c1_i32 = arith.constant 1 : i32
    %7 = tpu.dynamic_rotate %0 by %c1_i32 dim 1 : vector<2x16x8xf32>, i32 -> vector<2x16x8xf32>
    %c1_i32_3 = arith.constant 1 : i32
    %8 = vector.broadcast %c1_i32_3 : i32 to vector<2x16x8xi32>
    %9 = arith.cmpi sge, %1, %8 : vector<2x16x8xi32>
    %cst_4 = arith.constant 0.000000e+00 : f32
    %10 = vector.broadcast %cst_4 : f32 to vector<2x16x8xf32>
    %11 = arith.select %9, %7, %10 : vector<2x16x8xi1>, vector<2x16x8xf32>
    %12 = tpu.concatenate %6, %11, %0 in 2 : vector<2x16x8xf32>, vector<2x16x8xf32>, vector<2x16x8xf32> -> vector<2x16x24xf32>
    %13 = vector.shape_cast %12 : vector<2x16x24xf32> to vector<32x24xf32>
    %c0_5 = arith.constant 0 : index
    %c0_6 = arith.constant 0 : index
    %14 = vector.load %arg1[%c0_5, %c0_6] : memref<24x64xf32, #tpu.memory_space<vmem>>, vector<24x64xf32>
    %cst_7 = arith.constant dense<0.000000e+00> : vector<32x64xf32>
    %15 = tpu.matmul %13, %14, %cst_7 {dimension_numbers = #tpu.dot_dimension_numbers<[1], [0], [0], [1], [0, 0, 1, 1], [], []>} : vector<32x24xf32>, vector<24x64xf32>, vector<32x64xf32> -> vector<32x64xf32>
    %16 = vector.extract_strided_slice %15 {offsets = [0, 0], sizes = [32, 32], strides = [1, 1]} : vector<32x64xf32> to vector<32x32xf32>
    %17 = vector.shape_cast %16 : vector<32x32xf32> to vector<2x16x32xf32>
    %c0_8 = arith.constant 0 : index
    %c0_9 = arith.constant 0 : index
    %18 = vector.load %arg3[%c0_8, %c0_9] : memref<16x32xf32, #tpu.memory_space<vmem>>, vector<1x32xf32>
    %19 = vector.shape_cast %18 : vector<1x32xf32> to vector<1x1x32xf32>
    %20 = vector.broadcast %19 : vector<1x1x32xf32> to vector<2x16x32xf32>
    %21 = arith.addf %17, %20 : vector<2x16x32xf32>
    %cst_10 = arith.constant 0.000000e+00 : f32
    %22 = vector.broadcast %cst_10 : f32 to vector<2x16x32xf32>
    %23 = arith.maximumf %21, %22 : vector<2x16x32xf32>
    %24 = vector.extract_strided_slice %15 {offsets = [0, 32], sizes = [32, 32], strides = [1, 1]} : vector<32x64xf32> to vector<32x32xf32>
    %25 = vector.shape_cast %24 : vector<32x32xf32> to vector<2x16x32xf32>
    %c6 = arith.constant 6 : index
    %c0_11 = arith.constant 0 : index
    %26 = vector.load %arg3[%c6, %c0_11] : memref<16x32xf32, #tpu.memory_space<vmem>>, vector<1x32xf32>
    %27 = vector.shape_cast %26 : vector<1x32xf32> to vector<1x1x32xf32>
    %28 = vector.broadcast %27 : vector<1x1x32xf32> to vector<2x16x32xf32>
    %29 = arith.addf %25, %28 : vector<2x16x32xf32>
    %30 = tpu.iota {dimensions = array<i32: 1>} : vector<2x16x32xi32>
    %c2_i32_12 = arith.constant 2 : i32
    %31 = tpu.dynamic_rotate %23 by %c2_i32_12 dim 1 : vector<2x16x32xf32>, i32 -> vector<2x16x32xf32>
    %c2_i32_13 = arith.constant 2 : i32
    %32 = vector.broadcast %c2_i32_13 : i32 to vector<2x16x32xi32>
    %33 = arith.cmpi sge, %30, %32 : vector<2x16x32xi32>
    %cst_14 = arith.constant 0.000000e+00 : f32
    %34 = vector.broadcast %cst_14 : f32 to vector<2x16x32xf32>
    %35 = arith.select %33, %31, %34 : vector<2x16x32xi1>, vector<2x16x32xf32>
    %c1_i32_15 = arith.constant 1 : i32
    %36 = tpu.dynamic_rotate %23 by %c1_i32_15 dim 1 : vector<2x16x32xf32>, i32 -> vector<2x16x32xf32>
    %c1_i32_16 = arith.constant 1 : i32
    %37 = vector.broadcast %c1_i32_16 : i32 to vector<2x16x32xi32>
    %38 = arith.cmpi sge, %30, %37 : vector<2x16x32xi32>
    %cst_17 = arith.constant 0.000000e+00 : f32
    %39 = vector.broadcast %cst_17 : f32 to vector<2x16x32xf32>
    %40 = arith.select %38, %36, %39 : vector<2x16x32xi1>, vector<2x16x32xf32>
    %41 = tpu.concatenate %35, %40, %23 in 2 : vector<2x16x32xf32>, vector<2x16x32xf32>, vector<2x16x32xf32> -> vector<2x16x96xf32>
    %42 = vector.shape_cast %41 : vector<2x16x96xf32> to vector<32x96xf32>
    %c0_18 = arith.constant 0 : index
    %c0_19 = arith.constant 0 : index
    %c0_20 = arith.constant 0 : index
    %43 = vector.load %arg2[%c0_18, %c0_19, %c0_20] : memref<5x96x32xf32, #tpu.memory_space<vmem>>, vector<1x96x32xf32>
    %44 = vector.shape_cast %43 : vector<1x96x32xf32> to vector<96x32xf32>
    %cst_21 = arith.constant dense<0.000000e+00> : vector<32x32xf32>
    %45 = tpu.matmul %42, %44, %cst_21 {dimension_numbers = #tpu.dot_dimension_numbers<[1], [0], [0], [1], [0, 0, 1, 1], [], []>} : vector<32x96xf32>, vector<96x32xf32>, vector<32x32xf32> -> vector<32x32xf32>
    %46 = vector.shape_cast %45 : vector<32x32xf32> to vector<2x16x32xf32>
    %c1 = arith.constant 1 : index
    %c0_22 = arith.constant 0 : index
    %47 = vector.load %arg3[%c1, %c0_22] : memref<16x32xf32, #tpu.memory_space<vmem>>, vector<1x32xf32>
    %48 = vector.shape_cast %47 : vector<1x32xf32> to vector<1x1x32xf32>
    %49 = vector.broadcast %48 : vector<1x1x32xf32> to vector<2x16x32xf32>
    %50 = arith.addf %46, %49 : vector<2x16x32xf32>
    %cst_23 = arith.constant 0.000000e+00 : f32
    %51 = vector.broadcast %cst_23 : f32 to vector<2x16x32xf32>
    %52 = arith.maximumf %50, %51 : vector<2x16x32xf32>
    %53 = arith.addf %52, %29 : vector<2x16x32xf32>
    %cst_24 = arith.constant 0.000000e+00 : f32
    %54 = vector.broadcast %cst_24 : f32 to vector<2x16x32xf32>
    %55 = arith.maximumf %53, %54 : vector<2x16x32xf32>
    %56 = tpu.iota {dimensions = array<i32: 1>} : vector<2x16x32xi32>
    %c4_i32 = arith.constant 4 : i32
    %57 = tpu.dynamic_rotate %55 by %c4_i32 dim 1 : vector<2x16x32xf32>, i32 -> vector<2x16x32xf32>
    %c4_i32_25 = arith.constant 4 : i32
    %58 = vector.broadcast %c4_i32_25 : i32 to vector<2x16x32xi32>
    %59 = arith.cmpi sge, %56, %58 : vector<2x16x32xi32>
    %cst_26 = arith.constant 0.000000e+00 : f32
    %60 = vector.broadcast %cst_26 : f32 to vector<2x16x32xf32>
    %61 = arith.select %59, %57, %60 : vector<2x16x32xi1>, vector<2x16x32xf32>
    %c2_i32_27 = arith.constant 2 : i32
    %62 = tpu.dynamic_rotate %55 by %c2_i32_27 dim 1 : vector<2x16x32xf32>, i32 -> vector<2x16x32xf32>
    %c2_i32_28 = arith.constant 2 : i32
    %63 = vector.broadcast %c2_i32_28 : i32 to vector<2x16x32xi32>
    %64 = arith.cmpi sge, %56, %63 : vector<2x16x32xi32>
    %cst_29 = arith.constant 0.000000e+00 : f32
    %65 = vector.broadcast %cst_29 : f32 to vector<2x16x32xf32>
    %66 = arith.select %64, %62, %65 : vector<2x16x32xi1>, vector<2x16x32xf32>
    %67 = tpu.concatenate %61, %66, %55 in 2 : vector<2x16x32xf32>, vector<2x16x32xf32>, vector<2x16x32xf32> -> vector<2x16x96xf32>
    %68 = vector.shape_cast %67 : vector<2x16x96xf32> to vector<32x96xf32>
    %c1_30 = arith.constant 1 : index
    %c0_31 = arith.constant 0 : index
    %c0_32 = arith.constant 0 : index
    %69 = vector.load %arg2[%c1_30, %c0_31, %c0_32] : memref<5x96x32xf32, #tpu.memory_space<vmem>>, vector<1x96x32xf32>
    %70 = vector.shape_cast %69 : vector<1x96x32xf32> to vector<96x32xf32>
    %cst_33 = arith.constant dense<0.000000e+00> : vector<32x32xf32>
    %71 = tpu.matmul %68, %70, %cst_33 {dimension_numbers = #tpu.dot_dimension_numbers<[1], [0], [0], [1], [0, 0, 1, 1], [], []>} : vector<32x96xf32>, vector<96x32xf32>, vector<32x32xf32> -> vector<32x32xf32>
    %72 = vector.shape_cast %71 : vector<32x32xf32> to vector<2x16x32xf32>
    %c2 = arith.constant 2 : index
    %c0_34 = arith.constant 0 : index
    %73 = vector.load %arg3[%c2, %c0_34] : memref<16x32xf32, #tpu.memory_space<vmem>>, vector<1x32xf32>
    %74 = vector.shape_cast %73 : vector<1x32xf32> to vector<1x1x32xf32>
    %75 = vector.broadcast %74 : vector<1x1x32xf32> to vector<2x16x32xf32>
    %76 = arith.addf %72, %75 : vector<2x16x32xf32>
    %cst_35 = arith.constant 0.000000e+00 : f32
    %77 = vector.broadcast %cst_35 : f32 to vector<2x16x32xf32>
    %78 = arith.maximumf %76, %77 : vector<2x16x32xf32>
    %79 = tpu.iota {dimensions = array<i32: 1>} : vector<2x16x32xi32>
    %c4_i32_36 = arith.constant 4 : i32
    %80 = tpu.dynamic_rotate %78 by %c4_i32_36 dim 1 : vector<2x16x32xf32>, i32 -> vector<2x16x32xf32>
    %c4_i32_37 = arith.constant 4 : i32
    %81 = vector.broadcast %c4_i32_37 : i32 to vector<2x16x32xi32>
    %82 = arith.cmpi sge, %79, %81 : vector<2x16x32xi32>
    %cst_38 = arith.constant 0.000000e+00 : f32
    %83 = vector.broadcast %cst_38 : f32 to vector<2x16x32xf32>
    %84 = arith.select %82, %80, %83 : vector<2x16x32xi1>, vector<2x16x32xf32>
    %c2_i32_39 = arith.constant 2 : i32
    %85 = tpu.dynamic_rotate %78 by %c2_i32_39 dim 1 : vector<2x16x32xf32>, i32 -> vector<2x16x32xf32>
    %c2_i32_40 = arith.constant 2 : i32
    %86 = vector.broadcast %c2_i32_40 : i32 to vector<2x16x32xi32>
    %87 = arith.cmpi sge, %79, %86 : vector<2x16x32xi32>
    %cst_41 = arith.constant 0.000000e+00 : f32
    %88 = vector.broadcast %cst_41 : f32 to vector<2x16x32xf32>
    %89 = arith.select %87, %85, %88 : vector<2x16x32xi1>, vector<2x16x32xf32>
    %90 = tpu.concatenate %84, %89, %78 in 2 : vector<2x16x32xf32>, vector<2x16x32xf32>, vector<2x16x32xf32> -> vector<2x16x96xf32>
    %91 = vector.shape_cast %90 : vector<2x16x96xf32> to vector<32x96xf32>
    %c2_42 = arith.constant 2 : index
    %c0_43 = arith.constant 0 : index
    %c0_44 = arith.constant 0 : index
    %92 = vector.load %arg2[%c2_42, %c0_43, %c0_44] : memref<5x96x32xf32, #tpu.memory_space<vmem>>, vector<1x96x32xf32>
    %93 = vector.shape_cast %92 : vector<1x96x32xf32> to vector<96x32xf32>
    %cst_45 = arith.constant dense<0.000000e+00> : vector<32x32xf32>
    %94 = tpu.matmul %91, %93, %cst_45 {dimension_numbers = #tpu.dot_dimension_numbers<[1], [0], [0], [1], [0, 0, 1, 1], [], []>} : vector<32x96xf32>, vector<96x32xf32>, vector<32x32xf32> -> vector<32x32xf32>
    %95 = vector.shape_cast %94 : vector<32x32xf32> to vector<2x16x32xf32>
    %c3 = arith.constant 3 : index
    %c0_46 = arith.constant 0 : index
    %96 = vector.load %arg3[%c3, %c0_46] : memref<16x32xf32, #tpu.memory_space<vmem>>, vector<1x32xf32>
    %97 = vector.shape_cast %96 : vector<1x32xf32> to vector<1x1x32xf32>
    %98 = vector.broadcast %97 : vector<1x1x32xf32> to vector<2x16x32xf32>
    %99 = arith.addf %95, %98 : vector<2x16x32xf32>
    %cst_47 = arith.constant 0.000000e+00 : f32
    %100 = vector.broadcast %cst_47 : f32 to vector<2x16x32xf32>
    %101 = arith.maximumf %99, %100 : vector<2x16x32xf32>
    %102 = arith.addf %101, %55 : vector<2x16x32xf32>
    %cst_48 = arith.constant 0.000000e+00 : f32
    %103 = vector.broadcast %cst_48 : f32 to vector<2x16x32xf32>
    %104 = arith.maximumf %102, %103 : vector<2x16x32xf32>
    %105 = tpu.iota {dimensions = array<i32: 1>} : vector<2x16x32xi32>
    %c8_i32 = arith.constant 8 : i32
    %106 = tpu.dynamic_rotate %104 by %c8_i32 dim 1 : vector<2x16x32xf32>, i32 -> vector<2x16x32xf32>
    %c8_i32_49 = arith.constant 8 : i32
    %107 = vector.broadcast %c8_i32_49 : i32 to vector<2x16x32xi32>
    %108 = arith.cmpi sge, %105, %107 : vector<2x16x32xi32>
    %cst_50 = arith.constant 0.000000e+00 : f32
    %109 = vector.broadcast %cst_50 : f32 to vector<2x16x32xf32>
    %110 = arith.select %108, %106, %109 : vector<2x16x32xi1>, vector<2x16x32xf32>
    %c4_i32_51 = arith.constant 4 : i32
    %111 = tpu.dynamic_rotate %104 by %c4_i32_51 dim 1 : vector<2x16x32xf32>, i32 -> vector<2x16x32xf32>
    %c4_i32_52 = arith.constant 4 : i32
    %112 = vector.broadcast %c4_i32_52 : i32 to vector<2x16x32xi32>
    %113 = arith.cmpi sge, %105, %112 : vector<2x16x32xi32>
    %cst_53 = arith.constant 0.000000e+00 : f32
    %114 = vector.broadcast %cst_53 : f32 to vector<2x16x32xf32>
    %115 = arith.select %113, %111, %114 : vector<2x16x32xi1>, vector<2x16x32xf32>
    %116 = tpu.concatenate %110, %115, %104 in 2 : vector<2x16x32xf32>, vector<2x16x32xf32>, vector<2x16x32xf32> -> vector<2x16x96xf32>
    %117 = vector.shape_cast %116 : vector<2x16x96xf32> to vector<32x96xf32>
    %c3_54 = arith.constant 3 : index
    %c0_55 = arith.constant 0 : index
    %c0_56 = arith.constant 0 : index
    %118 = vector.load %arg2[%c3_54, %c0_55, %c0_56] : memref<5x96x32xf32, #tpu.memory_space<vmem>>, vector<1x96x32xf32>
    %119 = vector.shape_cast %118 : vector<1x96x32xf32> to vector<96x32xf32>
    %cst_57 = arith.constant dense<0.000000e+00> : vector<32x32xf32>
    %120 = tpu.matmul %117, %119, %cst_57 {dimension_numbers = #tpu.dot_dimension_numbers<[1], [0], [0], [1], [0, 0, 1, 1], [], []>} : vector<32x96xf32>, vector<96x32xf32>, vector<32x32xf32> -> vector<32x32xf32>
    %121 = vector.shape_cast %120 : vector<32x32xf32> to vector<2x16x32xf32>
    %c4 = arith.constant 4 : index
    %c0_58 = arith.constant 0 : index
    %122 = vector.load %arg3[%c4, %c0_58] : memref<16x32xf32, #tpu.memory_space<vmem>>, vector<1x32xf32>
    %123 = vector.shape_cast %122 : vector<1x32xf32> to vector<1x1x32xf32>
    %124 = vector.broadcast %123 : vector<1x1x32xf32> to vector<2x16x32xf32>
    %125 = arith.addf %121, %124 : vector<2x16x32xf32>
    %cst_59 = arith.constant 0.000000e+00 : f32
    %126 = vector.broadcast %cst_59 : f32 to vector<2x16x32xf32>
    %127 = arith.maximumf %125, %126 : vector<2x16x32xf32>
    %128 = tpu.iota {dimensions = array<i32: 1>} : vector<2x16x32xi32>
    %c8_i32_60 = arith.constant 8 : i32
    %129 = tpu.dynamic_rotate %127 by %c8_i32_60 dim 1 : vector<2x16x32xf32>, i32 -> vector<2x16x32xf32>
    %c8_i32_61 = arith.constant 8 : i32
    %130 = vector.broadcast %c8_i32_61 : i32 to vector<2x16x32xi32>
    %131 = arith.cmpi sge, %128, %130 : vector<2x16x32xi32>
    %cst_62 = arith.constant 0.000000e+00 : f32
    %132 = vector.broadcast %cst_62 : f32 to vector<2x16x32xf32>
    %133 = arith.select %131, %129, %132 : vector<2x16x32xi1>, vector<2x16x32xf32>
    %c4_i32_63 = arith.constant 4 : i32
    %134 = tpu.dynamic_rotate %127 by %c4_i32_63 dim 1 : vector<2x16x32xf32>, i32 -> vector<2x16x32xf32>
    %c4_i32_64 = arith.constant 4 : i32
    %135 = vector.broadcast %c4_i32_64 : i32 to vector<2x16x32xi32>
    %136 = arith.cmpi sge, %128, %135 : vector<2x16x32xi32>
    %cst_65 = arith.constant 0.000000e+00 : f32
    %137 = vector.broadcast %cst_65 : f32 to vector<2x16x32xf32>
    %138 = arith.select %136, %134, %137 : vector<2x16x32xi1>, vector<2x16x32xf32>
    %139 = tpu.concatenate %133, %138, %127 in 2 : vector<2x16x32xf32>, vector<2x16x32xf32>, vector<2x16x32xf32> -> vector<2x16x96xf32>
    %140 = vector.shape_cast %139 : vector<2x16x96xf32> to vector<32x96xf32>
    %c4_66 = arith.constant 4 : index
    %c0_67 = arith.constant 0 : index
    %c0_68 = arith.constant 0 : index
    %141 = vector.load %arg2[%c4_66, %c0_67, %c0_68] : memref<5x96x32xf32, #tpu.memory_space<vmem>>, vector<1x96x32xf32>
    %142 = vector.shape_cast %141 : vector<1x96x32xf32> to vector<96x32xf32>
    %cst_69 = arith.constant dense<0.000000e+00> : vector<32x32xf32>
    %143 = tpu.matmul %140, %142, %cst_69 {dimension_numbers = #tpu.dot_dimension_numbers<[1], [0], [0], [1], [0, 0, 1, 1], [], []>} : vector<32x96xf32>, vector<96x32xf32>, vector<32x32xf32> -> vector<32x32xf32>
    %144 = vector.shape_cast %143 : vector<32x32xf32> to vector<2x16x32xf32>
    %c5 = arith.constant 5 : index
    %c0_70 = arith.constant 0 : index
    %145 = vector.load %arg3[%c5, %c0_70] : memref<16x32xf32, #tpu.memory_space<vmem>>, vector<1x32xf32>
    %146 = vector.shape_cast %145 : vector<1x32xf32> to vector<1x1x32xf32>
    %147 = vector.broadcast %146 : vector<1x1x32xf32> to vector<2x16x32xf32>
    %148 = arith.addf %144, %147 : vector<2x16x32xf32>
    %cst_71 = arith.constant 0.000000e+00 : f32
    %149 = vector.broadcast %cst_71 : f32 to vector<2x16x32xf32>
    %150 = arith.maximumf %148, %149 : vector<2x16x32xf32>
    %151 = arith.addf %150, %104 : vector<2x16x32xf32>
    %cst_72 = arith.constant 0.000000e+00 : f32
    %152 = vector.broadcast %cst_72 : f32 to vector<2x16x32xf32>
    %153 = arith.maximumf %151, %152 : vector<2x16x32xf32>
    %154 = vector.extract_strided_slice %153 {offsets = [0, 15, 0], sizes = [2, 1, 32], strides = [1, 1, 1]} : vector<2x16x32xf32> to vector<2x1x32xf32>
    %155 = vector.shape_cast %154 : vector<2x1x32xf32> to vector<2x32xf32>
    %c7 = arith.constant 7 : index
    %c0_73 = arith.constant 0 : index
    %156 = vector.load %arg3[%c7, %c0_73] : memref<16x32xf32, #tpu.memory_space<vmem>>, vector<1x32xf32>
    %157 = vector.broadcast %156 : vector<1x32xf32> to vector<2x32xf32>
    %158 = arith.mulf %155, %157 : vector<2x32xf32>
    %cst_74 = arith.constant dense<0.000000e+00> : vector<2xf32>
    %159 = vector.multi_reduction <add>, %158, %cst_74 [1] : vector<2x32xf32> to vector<2xf32>
    %160 = vector.shape_cast %159 : vector<2xf32> to vector<2x1xf32>
    %c8 = arith.constant 8 : index
    %c0_75 = arith.constant 0 : index
    %161 = vector.load %arg3[%c8, %c0_75] : memref<16x32xf32, #tpu.memory_space<vmem>>, vector<1x1xf32>
    %162 = vector.broadcast %161 : vector<1x1xf32> to vector<2x1xf32>
    %163 = arith.addf %160, %162 : vector<2x1xf32>
    %c0_76 = arith.constant 0 : index
    %c0_77 = arith.constant 0 : index
    %164 = vector.load %arg4[%c0_76, %c0_77] : memref<2x1xf32, #tpu.memory_space<vmem>>, vector<2x1xf32>
    tpu.vector_store %arg4[%c0_76, %c0_77], %163 {strides = array<i32>} : memref<2x1xf32, #tpu.memory_space<vmem>>, vector<2x1xf32>,
    return
  }
}

</mosaic_0001>

<bundles_post_ra>
// kernel: tcn_ecf_forward.1
= control target key start
LH: loop header
LB: loop body
LE: loop exit
PB: predicated region body
PF: predicated region fallthrough
CT: control target
= control target key end

     0   :  { %v21_v0 = vlaneseq  ;;  %s1673_s21 = smov 16   ;;  %vm86_vm4 = vcmask 64512   ;;  %vm91_vm5 = vcmask 130048   ;;  %vm99_vm6 = vcmask 195584   ;;  %s1675_s28 = smov 64   ;;  %s2224_s0 = inlined_call_operand.vmem [shape: f32[2,16,8], index: 0, kind: input, shape index: {}]   ;;  %s2225_s1 = inlined_call_operand.vmem [shape: f32[24,64], index: 1, kind: input, shape index: {}]   ;;  %s2226_s2 = inlined_call_operand.vmem [shape: f32[5,96,32], index: 2, kind: input, shape index: {}]   ;;  %s2227_s3 = inlined_call_operand.vmem [shape: f32[16,32], index: 3, kind: input, shape index: {}]   ;;  %s2228_s4 = inlined_call_operand.vmem [shape: f32[2,1], index: 4, kind: output, shape index: {}]  }
   0x1   :  { %v17_v1 = vld [vmem:[%s2224_s0] sm:$0xff]  ;;  %v18_v2 = vld [vmem:[%s2224_s0 + $0x8] sm:$0xff]  ;;  %v19_v3 = vld [vmem:[%s2224_s0 + $0x10] sm:$0xff]  ;;  %s1676_s29 = smov 32   ;;  %vm279_vm7 = vcmask 261120   ;;  %vm284_vm8 = vcmask 523264  }
   0x2   :  { %74 = vrot.lane.b32.xlu1 %v17_v1, %s1673_s21  ;;  %v24_v4 = vrot.slane %v17_v1, 6  ;;  %v39_v5 = vrot.slane %v17_v1, 7  ;;  %v1713_v6 = vshrl.u32 %v21_v0, 7  ;;  %v41_v7 = vrot.slane %v18_v2, 7  ;;  %v20_v8 = vld [vmem:[%s2224_s0 + $0x18] sm:$0xff]  ;;  %v96_v12 = vld [vmem:[%s2225_s1] sm:$0xff] }
   0x3   :  { %v40_v9 = vrot.slane %v19_v3, 7  ;;  %v42_v10 = vrot.slane %v20_v8, 7  ;;  %v26_v11 = vrot.slane %v18_v2, 6  ;;  %v97_v13 = vld [vmem:[%s2225_s1 + $0x8] sm:$0xff]  ;;  %v25_v16 = vrot.slane %v19_v3, 6  ;;  %s1674_s0 = smov 8  }
   0x4   :  { %vm28_vm0 = vcmp.lt.s32.totalorder %v1713_v6, 2  ;;  %vm43_vm1 = vcmp.lt.s32.totalorder %v1713_v6, 1  ;;  %vm48_vm2 = vcmp.ge.s32.totalorder %v1713_v6, 1  ;;  %v1544_v18 = vpack.c.bf16 %v97_v13, %v96_v12  ;;  %v98_v24 = vld [vmem:[%s2225_s1 + $0x10] sm:$0xff]  ;;  %v289_v46 = vld [vmem:[%s2226_s2] sm:$0xff]  ;;  %v290_v47 = vld [vmem:[%s2226_s2 + $0x8] sm:$0xff] }
   0x5   :  { %v44_v14 = vsel %vm43_vm1, %v39_v5, %v41_v7  ;;  %v46_v15 = vsel %vm43_vm1, %v41_v7, %v39_v5  ;;  %v29_v17 = vsel %vm28_vm0, %v24_v4, %v26_v11  ;;  %v45_v20 = vsel %vm43_vm1, %v40_v9, %v42_v10  ;;  %v291_v48 = vld [vmem:[%s2226_s2 + $0x10] sm:$0xff]  ;;  %v292_v50 = vld [vmem:[%s2226_s2 + $0x18] sm:$0xff]  ;;  %v293_v52 = vld [vmem:[%s2226_s2 + $0x20] sm:$0xff]  ;;  %s1677_s5 = smov 96  }
   0x6   :  { %60 = vrot.lane.b32.xlu0 %v44_v14, %s1674_s0  ;;  %76 = vrot.lane.b32.xlu1 %v18_v2, %s1673_s21  ;;  %v50_v19 = vsel %vm48_vm2, %v46_v15, 0.0  ;;  %v31_v21 = vsel %vm28_vm0, %v26_v11, %v24_v4  ;;  %v27_v22 = vrot.slane %v20_v8, 6  ;;  %v47_v23 = vsel %vm43_vm1, %v42_v10, %v40_v9  ;;  %v294_v53 = vld [vmem:[%s2226_s2 + $0x28] sm:$0xff]  ;;  %v295_v55 = vld [vmem:[%s2226_s2 + $0x30] sm:$0xff] }
   0x7   :  { %1545 = vmatprep.subr.bf16.mxu0 %v1544_v18  ;;  %v52_v27 = vsel %vm48_vm2, %v47_v23, 0.0  ;;  %vm33_vm3 = vcmp.ge.s32.totalorder %v1713_v6, 2  ;;  %v1548_v49 = vpack.c.bf16 %v290_v47, %v289_v46  ;;  %v1552_v51 = vpack.c.bf16 %v292_v50, %v291_v48  ;;  %v296_v56 = vld [vmem:[%s2226_s2 + $0x38] sm:$0xff]  ;;  %v297_v58 = vld [vmem:[%s2226_s2 + $0x40] sm:$0xff]  ;;  %v298_v59 = vld [vmem:[%s2226_s2 + $0x48] sm:$0xff] }
   0x8   :  { %1547 = vmatpush3.bf16.msra.mxu0 %v1544_v18  ;;  %v30_v25 = vsel %vm28_vm0, %v25_v16, %v27_v22  ;;  %v32_v26 = vsel %vm28_vm0, %v27_v22, %v25_v16  ;;  %v35_v31 = vsel %vm33_vm3, %v31_v21, 0.0  ;;  %v1556_v54 = vpack.c.bf16 %v294_v53, %v293_v52  ;;  %v299_v61 = vld [vmem:[%s2226_s2 + $0x50] sm:$0xff]  ;;  %v300_v62 = vld [vmem:[%s2226_s2 + $0x58] sm:$0xff]  ;;  %v1218_v0 = vld [vmem:[%s2227_s3] ss:$0 sm:$0xff] }
   0x9   :  { %1386 = vmatprep.subr.mxu0 %v98_v24  ;;  %v37_v39 = vsel %vm33_vm3, %v32_v26, 0.0  ;;  %1549 = vmatprep.subr.bf16.mxu1 %v1548_v49  ;;  %v1560_v57 = vpack.c.bf16 %v296_v56, %v295_v55  ;;  %v1564_v60 = vpack.c.bf16 %v298_v59, %v297_v58  ;;  %v1568_v63 = vpack.c.bf16 %v300_v62, %v299_v61  ;;  %v1225_v56 = vld [vmem:[%s2226_s2 + $0x60] sm:$0xff]  ;;  %v1227_v58 = vld [vmem:[%s2226_s2 + $0x70] sm:$0xff] }
   0xa   :  { %58 = vrot.lane.b32.xlu0 %v50_v19, %s1674_s0  ;;  %64 = vrot.lane.b32.xlu1 %v45_v20, %s1674_s0  ;;  %vm301_vm9 = vcmask 785408   ;;  %v1229_v62 = vld [vmem:[%s2226_s2 + $0x80] sm:$0xff]  ;;  %vm440_vm10 = vcmp.lt.s32.totalorder %v1713_v6, 4  ;;  %vm445_vm11 = vcmp.ge.s32.totalorder %v1713_v6, 4  ;;  %vm1191_vm12 = vcmask 261127  }
   0xb   :  { %1551 = vmatpush3.bf16.msra.mxu1 %v1548_v49  ;;  %vm1195_vm13 = vcmask 253952   ;;  %vm1206_vm14 = vcmask 7175   ;;  %vm1208_vm15 = vcmask 0  }
   0xc   :  { %1387 = vmatpush3.msra.mxu0 %v98_v24  ;;  %1553 = vmatprep.subr.bf16.mxu1 %v1552_v51 }
   0xe   :  { %62 = vrot.lane.b32.xlu0 %v52_v27, %s1674_s0  ;;  %80 = vrot.lane.b32.xlu1 %v20_v8, %s1673_s21 }
   0xf   :  { %1555 = vmatpush3.bf16.msra.mxu1 %v1552_v51 }
  0x10   :  { %1557 = vmatprep.subr.bf16.mxu1 %v1556_v54 }
  0x12   :  { %78 = vrot.lane.b32.xlu0 %v19_v3, %s1673_s21 }
  0x13   :  { %1559 = vmatpush3.bf16.msra.mxu1 %v1556_v54 }
  0x14   :  { %1561 = vmatprep.subr.bf16.mxu1 %v1560_v57 }
  0x17   :  { %1563 = vmatpush3.bf16.msra.mxu1 %v1560_v57  ;;  %v1226_v57 = vld [vmem:[%s2226_s2 + $0x68] sm:$0xff] }
  0x18   :  { %1565 = vmatprep.subr.bf16.mxu1 %v1564_v60  ;;  %v1572_v59 = vpack.c.bf16 %v1226_v57, %v1225_v56 }
  0x1a   :  { %1573 = vmatprep.subr.bf16.mxu0 %v1572_v59 }
  0x1b   :  { %1567 = vmatpush3.bf16.msra.mxu1 %v1564_v60  ;;  %v1228_v60 = vld [vmem:[%s2226_s2 + $0x78] sm:$0xff] }
  0x1c   :  { %1569 = vmatprep.subr.bf16.mxu1 %v1568_v63  ;;  %v1576_v61 = vpack.c.bf16 %v1228_v60, %v1227_v58 }
  0x1f   :  { %1571 = vmatpush3.bf16.msra.mxu1 %v1568_v63  ;;  %v1230_v63 = vld [vmem:[%s2226_s2 + $0x88] sm:$0xff] }
  0x74   :  { %v75_v28 = vpop.permute.xlu1 %74 }
  0x78   :  { %v61_v29 = vpop.permute.xlu0 %60  ;;  %v77_v30 = vpop.permute.xlu1 %76 }
  0x79   :  { %v88_v32 = vsel %vm86_vm4, %v29_v17, %v61_v29 }
  0x7a   :  { %v93_v37 = vsel %vm91_vm5, %v88_v32, %v77_v30  ;;  %v1219_v32 = vld [vmem:[%s2227_s3 + $0x6] ss:$0 sm:$0xff] }
  0x7c   :  { %v59_v33 = vpop.permute.xlu0 %58  ;;  %v65_v35 = vpop.permute.xlu1 %64 }
  0x7d   :  { %v87_v34 = vsel %vm86_vm4, %v35_v31, %v59_v33  ;;  %v90_v40 = vsel %vm86_vm4, %v30_v25, %v65_v35 }
  0x7e   :  { %v92_v36 = vsel %vm91_vm5, %v87_v34, %v75_v28 }
  0x7f   :  { %1388 = vmatprep.mubr.msk.f32.mxu0 %vm99_vm6, %v92_v36 }
  0x80   :  { %v63_v38 = vpop.permute.xlu0 %62  ;;  %1389 = vmatmul.mubr.msk.f32.vlgmr.msra.gmra.mrb[0].mxu0 %vm99_vm6, %v93_v37  ;;  %v81_v41 = vpop.permute.xlu1 %80 }
  0x81   :  { %v89_v42 = vsel %vm86_vm4, %v37_v39, %v63_v38  ;;  %v95_v45 = vsel %vm91_vm5, %v90_v40, %v81_v41  ;;  %1575 = vmatpush3.bf16.msra.mxu0 %v1572_v59 }
  0x82   :  { %1577 = vmatprep.subr.bf16.mxu0 %v1576_v61 }
  0x84   :  { %v79_v43 = vpop.permute.xlu0 %78 }
  0x85   :  { %v94_v44 = vsel %vm91_vm5, %v89_v42, %v79_v43  ;;  %1579 = vmatpush3.bf16.msra.mxu0 %v1576_v61 }
  0x86   :  { %1391 = vmatprep.mubr.msk.f32.mxu0 %vm99_vm6, %v94_v44 }
  0x87   :  { %1392 = vmatmul.mubr.msk.f32.gmra.mrb[2].mxu0 %vm99_vm6, %v95_v45 }
 0x153   :  { %v1809_v1 = vpop.f32.mrb[0].mxu0 }
 0x154   :  { %v203_v2 = vadd.f32 %v1809_v1, %v1218_v0  ;;  %v1812_v3 = vpop.f32.mrb[1].mxu0 }
 0x155   :  { %v202_v4 = vadd.f32 %v1218_v0, %v1812_v3 }
 0x156   :  { %v207_v5 = vmax.f32 %v203_v2, 0.0  ;;  %v1232_v2 = vld [vmem:[%s2226_s2 + $0x98] sm:$0xff] }
 0x157   :  { %v206_v7 = vmax.f32 %v202_v4, 0.0  ;;  %v1233_v4 = vld [vmem:[%s2226_s2 + $0xa0] sm:$0xff] }
 0x158   :  { %v225_v8 = vrot.slane %v207_v5, 6  ;;  %269 = vrot.lane.b32.xlu1 %v207_v5, %s1675_s28  ;;  %v237_v9 = vrot.slane %v207_v5, 7  ;;  %v1234_v5 = vld [vmem:[%s2226_s2 + $0xa8] sm:$0xff] }
 0x159   :  { %v223_v10 = vrot.slane %v206_v7, 6  ;;  %267 = vrot.lane.b32.xlu0 %v206_v7, %s1675_s28  ;;  %v235_v11 = vrot.slane %v206_v7, 7  ;;  %v1588_v7 = vpack.c.bf16 %v1234_v5, %v1233_v4 }
 0x15a   :  { %v1393_v12 = vpop.f32.mrb[2].mxu0 }
 0x15b   :  { %v205_v13 = vadd.f32 %v1393_v12, %v1218_v0  ;;  %v188_v14 = vpop.f32.mrb[3].mxu0  ;;  %v239_v15 = vsel %vm43_vm1, %v235_v11, %v237_v9  ;;  %v241_v16 = vsel %vm43_vm1, %v237_v9, %v235_v11  ;;  %v227_v17 = vsel %vm28_vm0, %v223_v10, %v225_v8  ;;  %v1235_v9 = vld [vmem:[%s2226_s2 + $0xb0] sm:$0xff] }
 0x15c   :  { %v204_v18 = vadd.f32 %v1218_v0, %v188_v14  ;;  %253 = vrot.lane.b32.xlu1 %v239_v15, %s1676_s29  ;;  %v243_v19 = vsel %vm48_vm2, %v241_v16, 0.0  ;;  %v229_v20 = vsel %vm28_vm0, %v225_v8, %v223_v10  ;;  %v1580_v0 = vpack.c.bf16 %v1230_v63, %v1229_v62  ;;  %v1224_v8 = vld [vmem:[%s2227_s3 + $0x1] ss:$0 sm:$0xff]  ;;  %v1236_v10 = vld [vmem:[%s2226_s2 + $0xb8] sm:$0xff] }
 0x15d   :  { %v209_v21 = vmax.f32 %v205_v13, 0.0  ;;  %251 = vrot.lane.b32.xlu0 %v243_v19, %s1676_s29  ;;  %v231_v38 = vsel %vm33_vm3, %v229_v20, 0.0  ;;  %v1592_v11 = vpack.c.bf16 %v1236_v10, %v1235_v9  ;;  %v1242_v9 = vld [vmem:[%s2226_s2 + $0xc0] sm:$0xff]  ;;  %v1243_v10 = vld [vmem:[%s2226_s2 + $0xc8] sm:$0xff] }
 0x15e   :  { %v208_v22 = vmax.f32 %v204_v18, 0.0  ;;  %1581 = vmatprep.subr.bf16.mxu0 %v1580_v0 }
 0x15f   :  { %v226_v23 = vrot.slane %v209_v21, 6  ;;  %v238_v24 = vrot.slane %v209_v21, 7  ;;  %1583 = vmatpush3.bf16.msra.mxu0 %v1580_v0 }
 0x160   :  { %v224_v25 = vrot.slane %v208_v22, 6  ;;  %v236_v26 = vrot.slane %v208_v22, 7 }
 0x162   :  { %v240_v27 = vsel %vm43_vm1, %v236_v26, %v238_v24  ;;  %v242_v28 = vsel %vm43_vm1, %v238_v24, %v236_v26  ;;  %v228_v29 = vsel %vm28_vm0, %v224_v25, %v226_v23  ;;  %v230_v30 = vsel %vm28_vm0, %v226_v23, %v224_v25 }
 0x163   :  { %257 = vrot.lane.b32.xlu1 %v240_v27, %s1676_s29  ;;  %v245_v31 = vsel %vm48_vm2, %v242_v28, 0.0  ;;  %v233_v44 = vsel %vm33_vm3, %v230_v30, 0.0 }
 0x164   :  { %255 = vrot.lane.b32.xlu0 %v245_v31, %s1676_s29 }
 0x167   :  { %273 = vrot.lane.b32.xlu1 %v209_v21, %s1675_s28 }
 0x168   :  { %271 = vrot.lane.b32.xlu0 %v208_v22, %s1675_s28 }
 0x16c   :  { %216 = vrot.lane.b32.xlu0 %v1219_v32, %s1676_s29 }
 0x1ca   :  { %v270_v33 = vpop.permute.xlu1 %269 }
 0x1cb   :  { %v268_v34 = vpop.permute.xlu0 %267 }
 0x1ce   :  { %v254_v35 = vpop.permute.xlu1 %253 }
 0x1cf   :  { %v281_v36 = vsel %vm279_vm7, %v227_v17, %v254_v35  ;;  %v252_v37 = vpop.permute.xlu0 %251 }
 0x1d0   :  { %v280_v39 = vsel %vm279_vm7, %v231_v38, %v252_v37  ;;  %v286_v41 = vsel %vm284_vm8, %v281_v36, %v270_v33 }
 0x1d1   :  { %v285_v40 = vsel %vm284_vm8, %v280_v39, %v268_v34 }
 0x1d2   :  { %1418 = vmatprep.mubr.msk.f32.mxu1 %vm301_vm9, %v285_v40 }
 0x1d3   :  { %1419 = vmatmul.mubr.msk.f32.vlgmr.msra.gmra.mrb[0].mxu1 %vm301_vm9, %v286_v41 }
 0x1d5   :  { %v258_v42 = vpop.permute.xlu1 %257 }
 0x1d6   :  { %v256_v43 = vpop.permute.xlu0 %255  ;;  %v283_v48 = vsel %vm279_vm7, %v228_v29, %v258_v42 }
 0x1d7   :  { %v282_v46 = vsel %vm279_vm7, %v233_v44, %v256_v43 }
 0x1d9   :  { %v274_v45 = vpop.permute.xlu1 %273 }
 0x1da   :  { %v272_v47 = vpop.permute.xlu0 %271  ;;  %v288_v50 = vsel %vm284_vm8, %v283_v48, %v274_v45 }
 0x1db   :  { %v287_v49 = vsel %vm284_vm8, %v282_v46, %v272_v47 }
 0x1dc   :  { %1421 = vmatprep.mubr.msk.f32.mxu1 %vm301_vm9, %v287_v49 }
 0x1dd   :  { %1422 = vmatmul.mubr.msk.f32.gmra.mrb[2].mxu1 %vm301_vm9, %v288_v50 }
 0x1de   :  { %v217_v51 = vpop.permute.xlu0 %216 }
 0x1df   :  { %v220_v52 = vadd.f32 %v1809_v1, %v217_v51  ;;  %v219_v53 = vadd.f32 %v217_v51, %v1812_v3  ;;  %v222_v54 = vadd.f32 %v1393_v12, %v217_v51  ;;  %v221_v55 = vadd.f32 %v217_v51, %v188_v14  ;;  %v1231_v1 = vld [vmem:[%s2226_s2 + $0x90] sm:$0xff] }
 0x1e0   :  { %v1584_v3 = vpack.c.bf16 %v1232_v2, %v1231_v1 }
 0x1e1   :  { %418 = vrot.lane.b32.xlu0 %v220_v52, %s1677_s5  ;;  %416 = vrot.lane.b32.xlu1 %v219_v53, %s1677_s5 }
 0x1e2   :  { %1585 = vmatprep.subr.bf16.mxu0 %v1584_v3 }
 0x1e3   :  { %1587 = vmatpush3.bf16.msra.mxu0 %v1584_v3 }
 0x1e4   :  { %1589 = vmatprep.subr.bf16.mxu0 %v1588_v7 }
 0x1e5   :  { %422 = vrot.lane.b32.xlu0 %v222_v54, %s1677_s5  ;;  %420 = vrot.lane.b32.xlu1 %v221_v55, %s1677_s5 }
 0x1e7   :  { %1591 = vmatpush3.bf16.msra.mxu0 %v1588_v7 }
 0x1e8   :  { %1593 = vmatprep.subr.bf16.mxu0 %v1592_v11 }
 0x1eb   :  { %1595 = vmatpush3.bf16.msra.mxu0 %v1592_v11  ;;  %v1244_v11 = vld [vmem:[%s2226_s2 + $0xd0] sm:$0xff] }
 0x253   :  { %v419_v17 = vpop.permute.xlu0 %418  ;;  %v417_v19 = vpop.permute.xlu1 %416 }
 0x257   :  { %v423_v34 = vpop.permute.xlu0 %422  ;;  %v421_v36 = vpop.permute.xlu1 %420 }
 0x2a6   :  { %v1420_v12 = vpop.f32.mrb[0].mxu1 }
 0x2a7   :  { %v405_v13 = vadd.f32 %v1420_v12, %v1224_v8  ;;  %v380_v14 = vpop.f32.mrb[1].mxu1  ;;  %v1596_v12 = vpack.c.bf16 %v1243_v10, %v1242_v9 }
 0x2a8   :  { %v404_v15 = vadd.f32 %v1224_v8, %v380_v14 }
 0x2a9   :  { %v409_v16 = vmax.f32 %v405_v13, 0.0  ;;  %v1245_v13 = vld [vmem:[%s2226_s2 + $0xd8] sm:$0xff]  ;;  %1597 = vmatprep.subr.bf16.mxu1 %v1596_v12 }
 0x2aa   :  { %v408_v18 = vmax.f32 %v404_v15, 0.0  ;;  %v1600_v14 = vpack.c.bf16 %v1245_v13, %v1244_v11  ;;  %v1246_v15 = vld [vmem:[%s2226_s2 + $0xe0] sm:$0xff]  ;;  %1599 = vmatpush3.bf16.msra.mxu1 %v1596_v12 }
 0x2ab   :  { %v429_v20 = vadd.f32 %v419_v17, %v409_v16  ;;  %v1247_v16 = vld [vmem:[%s2226_s2 + $0xe8] sm:$0xff] }
 0x2ac   :  { %v428_v21 = vadd.f32 %v417_v19, %v408_v18  ;;  %1601 = vmatprep.subr.bf16.mxu1 %v1600_v14  ;;  %v1604_v17 = vpack.c.bf16 %v1247_v16, %v1246_v15  ;;  %v1248_v18 = vld [vmem:[%s2226_s2 + $0xf0] sm:$0xff]  ;;  %v1249_v19 = vld [vmem:[%s2226_s2 + $0xf8] sm:$0xff] }
 0x2ad   :  { %v1904_v22 = vmax.f32 %v429_v20, 0.0  ;;  %v1608_v20 = vpack.c.bf16 %v1249_v19, %v1248_v18  ;;  %v1260_v18 = vld [vmem:[%s2226_s2 + $0x128] sm:$0xff]  ;;  %v1261_v19 = vld [vmem:[%s2226_s2 + $0x130] sm:$0xff] }
 0x2ae   :  { %v1906_v23 = vmax.f32 %v428_v21, 0.0  ;;  %1603 = vmatpush3.bf16.msra.mxu1 %v1600_v14  ;;  %v1250_v21 = vld [vmem:[%s2226_s2 + $0x100] sm:$0xff] }
 0x2af   :  { %485 = vrot.lane.b32.xlu0 %v1904_v22, %s1675_s28  ;;  %v453_v24 = vrot.slane %v1904_v22, 6  ;;  %v438_v46 = vrot.slane %v1904_v22, 4  ;;  %1605 = vmatprep.subr.bf16.mxu1 %v1604_v17 }
 0x2b0   :  { %483 = vrot.lane.b32.xlu1 %v1906_v23, %s1675_s28  ;;  %v1423_v25 = vpop.f32.mrb[2].mxu1  ;;  %v451_v26 = vrot.slane %v1906_v23, 6  ;;  %v436_v47 = vrot.slane %v1906_v23, 4 }
 0x2b1   :  { %v407_v27 = vadd.f32 %v1423_v25, %v1224_v8  ;;  %v390_v28 = vpop.f32.mrb[3].mxu1 }
 0x2b2   :  { %v406_v29 = vadd.f32 %v1224_v8, %v390_v28  ;;  %v455_v30 = vsel %vm28_vm0, %v451_v26, %v453_v24  ;;  %v457_v31 = vsel %vm28_vm0, %v453_v24, %v451_v26  ;;  %v443_v50 = vsel %vm440_vm10, %v438_v46, %v436_v47  ;;  %1607 = vmatpush3.bf16.msra.mxu1 %v1604_v17  ;;  %v1251_v24 = vld [vmem:[%s2226_s2 + $0x108] sm:$0xff]  ;;  %v1252_v26 = vld [vmem:[%s2226_s2 + $0x110] sm:$0xff]  ;;  %v1259_v17 = vld [vmem:[%s2226_s2 + $0x120] sm:$0xff] }
 0x2b3   :  { %v411_v32 = vmax.f32 %v407_v27, 0.0  ;;  %469 = vrot.lane.b32.xlu0 %v455_v30, %s1676_s29  ;;  %v459_v33 = vsel %vm33_vm3, %v457_v31, 0.0  ;;  %v441_v52 = vsel %vm440_vm10, %v436_v47, %v438_v46  ;;  %v447_v54 = vsel %vm445_vm11, %v443_v50, 0.0  ;;  %1609 = vmatprep.subr.bf16.mxu1 %v1608_v20  ;;  %v1253_v27 = vld [vmem:[%s2226_s2 + $0x118] sm:$0xff] }
 0x2b4   :  { %v410_v35 = vmax.f32 %v406_v29, 0.0  ;;  %467 = vrot.lane.b32.xlu1 %v459_v33, %s1676_s29  ;;  %v1612_v25 = vpack.c.bf16 %v1251_v24, %v1250_v21  ;;  %v1616_v28 = vpack.c.bf16 %v1253_v27, %v1252_v26  ;;  %v1241_v29 = vld [vmem:[%s2227_s3 + $0x2] ss:$0 sm:$0xff]  ;;  %v1262_v21 = vld [vmem:[%s2226_s2 + $0x138] sm:$0xff]  ;;  %v1264_v26 = vld [vmem:[%s2226_s2 + $0x148] sm:$0xff] }
 0x2b5   :  { %v431_v37 = vadd.f32 %v423_v34, %v411_v32  ;;  %v1624_v24 = vpack.c.bf16 %v1262_v21, %v1261_v19  ;;  %v1276_v19 = vld [vmem:[%s2226_s2 + $0x180] sm:$0xff]  ;;  %v1278_v21 = vld [vmem:[%s2226_s2 + $0x190] sm:$0xff] }
 0x2b6   :  { %v430_v38 = vadd.f32 %v421_v36, %v410_v35  ;;  %1611 = vmatpush3.bf16.msra.mxu1 %v1608_v20  ;;  %v1620_v20 = vpack.c.bf16 %v1260_v18, %v1259_v17 }
 0x2b7   :  { %v1922_v39 = vmax.f32 %v431_v37, 0.0  ;;  %1613 = vmatprep.subr.bf16.mxu1 %v1612_v25 }
 0x2b8   :  { %v1924_v40 = vmax.f32 %v430_v38, 0.0  ;;  %1621 = vmatprep.subr.bf16.mxu0 %v1620_v20 }
 0x2b9   :  { %v454_v41 = vrot.slane %v1922_v39, 6  ;;  %v439_v59 = vrot.slane %v1922_v39, 4 }
 0x2ba   :  { %v452_v42 = vrot.slane %v1924_v40, 6  ;;  %v437_v60 = vrot.slane %v1924_v40, 4  ;;  %1615 = vmatpush3.bf16.msra.mxu1 %v1612_v25  ;;  %v1263_v25 = vld [vmem:[%s2226_s2 + $0x140] sm:$0xff] }
 0x2bb   :  { %1617 = vmatprep.subr.bf16.mxu1 %v1616_v28  ;;  %v1628_v27 = vpack.c.bf16 %v1264_v26, %v1263_v25  ;;  %v1279_v25 = vld [vmem:[%s2226_s2 + $0x198] sm:$0xff] }
 0x2bc   :  { %v456_v43 = vsel %vm28_vm0, %v452_v42, %v454_v41  ;;  %v458_v44 = vsel %vm28_vm0, %v454_v41, %v452_v42  ;;  %v444_v63 = vsel %vm440_vm10, %v439_v59, %v437_v60  ;;  %v442_v2 = vsel %vm440_vm10, %v437_v60, %v439_v59 }
 0x2bd   :  { %473 = vrot.lane.b32.xlu0 %v456_v43, %s1676_s29  ;;  %v461_v45 = vsel %vm33_vm3, %v458_v44, 0.0  ;;  %v449_v0 = vsel %vm445_vm11, %v444_v63, 0.0  ;;  %v1648_v26 = vpack.c.bf16 %v1279_v25, %v1278_v21 }
 0x2be   :  { %471 = vrot.lane.b32.xlu1 %v461_v45, %s1676_s29  ;;  %1619 = vmatpush3.bf16.msra.mxu1 %v1616_v28  ;;  %v1265_v28 = vld [vmem:[%s2226_s2 + $0x150] sm:$0xff] }
 0x2c1   :  { %489 = vrot.lane.b32.xlu0 %v1922_v39, %s1675_s28 }
 0x2c2   :  { %487 = vrot.lane.b32.xlu1 %v1924_v40, %s1675_s28 }
 0x321   :  { %v486_v48 = vpop.permute.xlu0 %485 }
 0x322   :  { %v484_v49 = vpop.permute.xlu1 %483 }
 0x325   :  { %v470_v51 = vpop.permute.xlu0 %469 }
 0x326   :  { %v496_v53 = vsel %vm279_vm7, %v441_v52, %v470_v51  ;;  %v468_v55 = vpop.permute.xlu1 %467 }
 0x327   :  { %v495_v56 = vsel %vm279_vm7, %v447_v54, %v468_v55  ;;  %v500_v58 = vsel %vm284_vm8, %v496_v53, %v486_v48 }
 0x328   :  { %v499_v57 = vsel %vm284_vm8, %v495_v56, %v484_v49 }
 0x329   :  { %1448 = vmatprep.mubr.msk.f32.mxu0 %vm301_vm9, %v499_v57 }
 0x32a   :  { %1449 = vmatmul.mubr.msk.f32.vlgmr.msra.gmra.mrb[4].mxu0 %vm301_vm9, %v500_v58 }
 0x32b   :  { %1623 = vmatpush3.bf16.msra.mxu0 %v1620_v20  ;;  %v1277_v20 = vld [vmem:[%s2226_s2 + $0x188] sm:$0xff] }
 0x32c   :  { %1625 = vmatprep.subr.bf16.mxu0 %v1624_v24 }
 0x32f   :  { %v474_v61 = vpop.permute.xlu0 %473  ;;  %1627 = vmatpush3.bf16.msra.mxu0 %v1624_v24  ;;  %v1644_v24 = vpack.c.bf16 %v1277_v20, %v1276_v19  ;;  %v1293_v20 = vld [vmem:[%s2227_s3 + $0x7] ss:$0 sm:$0xff] }
 0x330   :  { %v472_v62 = vpop.permute.xlu1 %471  ;;  %v498_v5 = vsel %vm279_vm7, %v442_v2, %v474_v61  ;;  %1629 = vmatprep.subr.bf16.mxu0 %v1628_v27 }
 0x331   :  { %v497_v3 = vsel %vm279_vm7, %v449_v0, %v472_v62  ;;  %1645 = vmatprep.subr.bf16.mxu1 %v1644_v24 }
 0x333   :  { %v490_v1 = vpop.permute.xlu0 %489  ;;  %1631 = vmatpush3.bf16.msra.mxu0 %v1628_v27  ;;  %v1280_v27 = vld [vmem:[%s2226_s2 + $0x1a0] sm:$0xff] }
 0x334   :  { %v488_v4 = vpop.permute.xlu1 %487  ;;  %v502_v8 = vsel %vm284_vm8, %v498_v5, %v490_v1 }
 0x335   :  { %v501_v7 = vsel %vm284_vm8, %v497_v3, %v488_v4 }
 0x336   :  { %1451 = vmatprep.mubr.msk.f32.mxu0 %vm301_vm9, %v501_v7 }
 0x337   :  { %1452 = vmatmul.mubr.msk.f32.gmra.mrb[6].mxu0 %vm301_vm9, %v502_v8 }
 0x3fd   :  { %v1450_v30 = vpop.f32.mrb[4].mxu0 }
 0x3fe   :  { %v619_v31 = vadd.f32 %v1450_v30, %v1241_v29  ;;  %v594_v32 = vpop.f32.mrb[5].mxu0 }
 0x3ff   :  { %v618_v33 = vadd.f32 %v1241_v29, %v594_v32  ;;  %v1268_v32 = vld [vmem:[%s2226_s2 + $0x168] sm:$0xff] }
 0x400   :  { %v623_v34 = vmax.f32 %v619_v31, 0.0  ;;  %v1267_v31 = vld [vmem:[%s2226_s2 + $0x160] sm:$0xff] }
 0x401   :  { %v622_v35 = vmax.f32 %v618_v33, 0.0  ;;  %v1636_v33 = vpack.c.bf16 %v1268_v32, %v1267_v31  ;;  %v1283_v31 = vld [vmem:[%s2226_s2 + $0x1b8] sm:$0xff] }
 0x402   :  { %v628_v36 = vrot.slane %v623_v34, 4  ;;  %v640_v37 = vrot.slane %v623_v34, 6  ;;  %672 = vrot.lane.b32.xlu0 %v623_v34, %s1675_s28  ;;  %v1258_v34 = vld [vmem:[%s2227_s3 + $0x3] ss:$0 sm:$0xff] }
 0x403   :  { %v626_v38 = vrot.slane %v622_v35, 4  ;;  %v638_v41 = vrot.slane %v622_v35, 6  ;;  %670 = vrot.lane.b32.xlu1 %v622_v35, %s1675_s28  ;;  %v1269_v35 = vld [vmem:[%s2226_s2 + $0x170] sm:$0xff] }
 0x405   :  { %v642_v42 = vsel %vm28_vm0, %v638_v41, %v640_v37  ;;  %v644_v43 = vsel %vm28_vm0, %v640_v37, %v638_v41  ;;  %v630_v44 = vsel %vm440_vm10, %v626_v38, %v628_v36  ;;  %v632_v45 = vsel %vm440_vm10, %v628_v36, %v626_v38  ;;  %v1270_v36 = vld [vmem:[%s2226_s2 + $0x178] sm:$0xff] }
 0x406   :  { %656 = vrot.lane.b32.xlu0 %v642_v42, %s1676_s29  ;;  %v646_v46 = vsel %vm33_vm3, %v644_v43, 0.0  ;;  %v634_v2 = vsel %vm445_vm11, %v632_v45, 0.0  ;;  %v1640_v37 = vpack.c.bf16 %v1270_v36, %v1269_v35  ;;  %v1286_v36 = vld [vmem:[%s2226_s2 + $0x1d0] sm:$0xff] }
 0x407   :  { %654 = vrot.lane.b32.xlu1 %v646_v46, %s1676_s29 }
 0x40a   :  { %v1453_v47 = vpop.f32.mrb[6].mxu0 }
 0x40b   :  { %v621_v48 = vadd.f32 %v1453_v47, %v1241_v29  ;;  %v604_v49 = vpop.f32.mrb[7].mxu0 }
 0x40c   :  { %v620_v50 = vadd.f32 %v1241_v29, %v604_v49  ;;  %v1266_v29 = vld [vmem:[%s2226_s2 + $0x158] sm:$0xff] }
 0x40d   :  { %v625_v51 = vmax.f32 %v621_v48, 0.0  ;;  %v1632_v30 = vpack.c.bf16 %v1266_v29, %v1265_v28  ;;  %v1281_v28 = vld [vmem:[%s2226_s2 + $0x1a8] sm:$0xff] }
 0x40e   :  { %v624_v52 = vmax.f32 %v620_v50, 0.0  ;;  %v1652_v29 = vpack.c.bf16 %v1281_v28, %v1280_v27 }
 0x40f   :  { %v629_v53 = vrot.slane %v625_v51, 4  ;;  %v641_v54 = vrot.slane %v625_v51, 6  ;;  %1633 = vmatprep.subr.bf16.mxu0 %v1632_v30 }
 0x410   :  { %v627_v55 = vrot.slane %v624_v52, 4  ;;  %v639_v56 = vrot.slane %v624_v52, 6  ;;  %1635 = vmatpush3.bf16.msra.mxu0 %v1632_v30  ;;  %v1282_v30 = vld [vmem:[%s2226_s2 + $0x1b0] sm:$0xff] }
 0x411   :  { %1637 = vmatprep.subr.bf16.mxu0 %v1636_v33  ;;  %v1656_v32 = vpack.c.bf16 %v1283_v31, %v1282_v30 }
 0x412   :  { %v643_v57 = vsel %vm28_vm0, %v639_v56, %v641_v54  ;;  %v645_v58 = vsel %vm28_vm0, %v641_v54, %v639_v56  ;;  %v631_v59 = vsel %vm440_vm10, %v627_v55, %v629_v53  ;;  %v633_v60 = vsel %vm440_vm10, %v629_v53, %v627_v55 }
 0x413   :  { %660 = vrot.lane.b32.xlu0 %v643_v57, %s1676_s29  ;;  %v648_v61 = vsel %vm33_vm3, %v645_v58, 0.0  ;;  %v636_v10 = vsel %vm445_vm11, %v633_v60, 0.0 }
 0x414   :  { %658 = vrot.lane.b32.xlu1 %v648_v61, %s1676_s29  ;;  %1639 = vmatpush3.bf16.msra.mxu0 %v1636_v33  ;;  %v1284_v33 = vld [vmem:[%s2226_s2 + $0x1c0] sm:$0xff] }
 0x415   :  { %1641 = vmatprep.subr.bf16.mxu0 %v1640_v37 }
 0x417   :  { %676 = vrot.lane.b32.xlu0 %v625_v51, %s1675_s28 }
 0x418   :  { %674 = vrot.lane.b32.xlu1 %v624_v52, %s1675_s28  ;;  %1643 = vmatpush3.bf16.msra.mxu0 %v1640_v37  ;;  %v1287_v37 = vld [vmem:[%s2226_s2 + $0x1d8] sm:$0xff] }
 0x474   :  { %v673_v62 = vpop.permute.xlu0 %672 }
 0x475   :  { %v671_v63 = vpop.permute.xlu1 %670 }
 0x478   :  { %v657_v0 = vpop.permute.xlu0 %656 }
 0x479   :  { %v683_v1 = vsel %vm279_vm7, %v630_v44, %v657_v0  ;;  %v655_v3 = vpop.permute.xlu1 %654 }
 0x47a   :  { %v682_v4 = vsel %vm279_vm7, %v634_v2, %v655_v3  ;;  %v687_v7 = vsel %vm284_vm8, %v683_v1, %v673_v62 }
 0x47b   :  { %v686_v5 = vsel %vm284_vm8, %v682_v4, %v671_v63 }
 0x47c   :  { %1478 = vmatprep.mubr.msk.f32.mxu1 %vm301_vm9, %v686_v5 }
 0x47d   :  { %1479 = vmatmul.mubr.msk.f32.vlgmr.msra.gmra.mrb[4].mxu1 %vm301_vm9, %v687_v7 }
 0x47e   :  { %1647 = vmatpush3.bf16.msra.mxu1 %v1644_v24 }
 0x47f   :  { %1649 = vmatprep.subr.bf16.mxu1 %v1648_v26 }
 0x482   :  { %1651 = vmatpush3.bf16.msra.mxu1 %v1648_v26 }
 0x483   :  { %1653 = vmatprep.subr.bf16.mxu1 %v1652_v29 }
 0x485   :  { %v661_v8 = vpop.permute.xlu0 %660 }
 0x486   :  { %v659_v9 = vpop.permute.xlu1 %658  ;;  %v685_v14 = vsel %vm279_vm7, %v631_v59, %v661_v8  ;;  %1655 = vmatpush3.bf16.msra.mxu1 %v1652_v29 }
 0x487   :  { %v684_v12 = vsel %vm279_vm7, %v636_v10, %v659_v9  ;;  %1657 = vmatprep.subr.bf16.mxu1 %v1656_v32 }
 0x489   :  { %v677_v11 = vpop.permute.xlu0 %676 }
 0x48a   :  { %v675_v13 = vpop.permute.xlu1 %674  ;;  %v689_v16 = vsel %vm284_vm8, %v685_v14, %v677_v11  ;;  %1659 = vmatpush3.bf16.msra.mxu1 %v1656_v32 }
 0x48b   :  { %v688_v15 = vsel %vm284_vm8, %v684_v12, %v675_v13 }
 0x48c   :  { %1481 = vmatprep.mubr.msk.f32.mxu1 %vm301_vm9, %v688_v15 }
 0x48d   :  { %1482 = vmatmul.mubr.msk.f32.gmra.mrb[6].mxu1 %vm301_vm9, %v689_v16 }
 0x550   :  { %v1480_v38 = vpop.f32.mrb[4].mxu1 }
 0x551   :  { %v806_v41 = vadd.f32 %v1480_v38, %v1258_v34  ;;  %v781_v42 = vpop.f32.mrb[5].mxu1  ;;  %v1664_v38 = vpack.c.bf16 %v1287_v37, %v1286_v36 }
 0x552   :  { %v805_v43 = vadd.f32 %v1258_v34, %v781_v42 }
 0x553   :  { %v810_v44 = vmax.f32 %v806_v41, 0.0  ;;  %v1275_v41 = vld [vmem:[%s2227_s3 + $0x4] ss:$0 sm:$0xff] }
 0x554   :  { %v809_v45 = vmax.f32 %v805_v43, 0.0 }
 0x555   :  { %v814_v46 = vadd.f32 %v810_v44, %v1904_v22 }
 0x556   :  { %v813_v47 = vadd.f32 %v809_v45, %v1906_v23 }
 0x557   :  { %v2094_v48 = vmax.f32 %v814_v46, 0.0 }
 0x558   :  { %v817_v49 = vmax.f32 %v813_v47, 0.0 }
 0x559   :  { %861 = vrot.lane.b32.xlu0 %v2094_v48, %s1675_s28  ;;  %v829_v50 = vrot.slane %v2094_v48, 4 }
 0x55a   :  { %859 = vrot.lane.b32.xlu1 %v817_v49, %s1675_s28  ;;  %v827_v51 = vrot.slane %v817_v49, 4 }
 0x55c   :  { %v831_v52 = vsel %vm440_vm10, %v827_v51, %v829_v50  ;;  %v833_v53 = vsel %vm440_vm10, %v829_v50, %v827_v51 }
 0x55d   :  { %845 = vrot.lane.b32.xlu0 %v831_v52, %s1676_s29  ;;  %v835_v22 = vsel %vm445_vm11, %v833_v53, 0.0 }
 0x55e   :  { %843 = vrot.lane.b32.xlu1 %v835_v22, %s1676_s29 }
 0x560   :  { %v1483_v23 = vpop.f32.mrb[6].mxu1 }
 0x561   :  { %v808_v54 = vadd.f32 %v1483_v23, %v1258_v34  ;;  %v791_v55 = vpop.f32.mrb[7].mxu1 }
 0x562   :  { %v807_v56 = vadd.f32 %v1258_v34, %v791_v55  ;;  %v1285_v34 = vld [vmem:[%s2226_s2 + $0x1c8] sm:$0xff] }
 0x563   :  { %v812_v57 = vmax.f32 %v808_v54, 0.0  ;;  %v1660_v35 = vpack.c.bf16 %v1285_v34, %v1284_v33  ;;  %v1294_v34 = vld [vmem:[%s2227_s3 + $0x8] ss:$0 sm:$0xff] }
 0x564   :  { %v811_v58 = vmax.f32 %v807_v56, 0.0 }
 0x565   :  { %v816_v59 = vadd.f32 %v812_v57, %v1922_v39  ;;  %1661 = vmatprep.subr.bf16.mxu1 %v1660_v35 }
 0x566   :  { %v815_v60 = vadd.f32 %v811_v58, %v1924_v40  ;;  %1663 = vmatpush3.bf16.msra.mxu1 %v1660_v35 }
 0x567   :  { %v2110_v61 = vmax.f32 %v816_v59, 0.0  ;;  %1665 = vmatprep.subr.bf16.mxu1 %v1664_v38 }
 0x568   :  { %v819_v62 = vmax.f32 %v815_v60, 0.0 }
 0x569   :  { %v830_v63 = vrot.slane %v2110_v61, 4 }
 0x56a   :  { %v828_v0 = vrot.slane %v819_v62, 4  ;;  %1667 = vmatpush3.bf16.msra.mxu1 %v1664_v38 }
 0x56c   :  { %v832_v1 = vsel %vm440_vm10, %v828_v0, %v830_v63  ;;  %v834_v2 = vsel %vm440_vm10, %v830_v63, %v828_v0 }
 0x56d   :  { %849 = vrot.lane.b32.xlu0 %v832_v1, %s1676_s29  ;;  %v837_v3 = vsel %vm445_vm11, %v834_v2, 0.0 }
 0x56e   :  { %847 = vrot.lane.b32.xlu1 %v837_v3, %s1676_s29 }
 0x571   :  { %865 = vrot.lane.b32.xlu0 %v2110_v61, %s1675_s28 }
 0x572   :  { %863 = vrot.lane.b32.xlu1 %v819_v62, %s1675_s28 }
 0x5cb   :  { %v862_v39 = vpop.permute.xlu0 %861 }
 0x5cc   :  { %v860_v40 = vpop.permute.xlu1 %859 }
 0x5cf   :  { %v846_v4 = vpop.permute.xlu0 %845 }
 0x5d0   :  { %v872_v5 = vsel %vm279_vm7, %v817_v49, %v846_v4  ;;  %v844_v7 = vpop.permute.xlu1 %843 }
 0x5d1   :  { %v871_v8 = vsel %vm279_vm7, 0.0, %v844_v7  ;;  %v876_v10 = vsel %vm284_vm8, %v872_v5, %v862_v39 }
 0x5d2   :  { %v875_v9 = vsel %vm284_vm8, %v871_v8, %v860_v40 }
 0x5d3   :  { %1508 = vmatprep.mubr.msk.f32.mxu0 %vm301_vm9, %v875_v9 }
 0x5d4   :  { %1509 = vmatmul.mubr.msk.f32.vlgmr.msra.gmra.mrb[8].mxu0 %vm301_vm9, %v876_v10 }
 0x5df   :  { %v850_v11 = vpop.permute.xlu0 %849 }
 0x5e0   :  { %v848_v12 = vpop.permute.xlu1 %847  ;;  %v874_v16 = vsel %vm279_vm7, %v819_v62, %v850_v11 }
 0x5e1   :  { %v873_v14 = vsel %vm279_vm7, 0.0, %v848_v12 }
 0x5e3   :  { %v866_v13 = vpop.permute.xlu0 %865 }
 0x5e4   :  { %v864_v15 = vpop.permute.xlu1 %863  ;;  %v878_v18 = vsel %vm284_vm8, %v874_v16, %v866_v13 }
 0x5e5   :  { %v877_v17 = vsel %vm284_vm8, %v873_v14, %v864_v15  ;;  %v1292_v14 = vld [vmem:[%s2227_s3 + $0x5] ss:$0 sm:$0xff] }
 0x5e6   :  { %1511 = vmatprep.mubr.msk.f32.mxu0 %vm301_vm9, %v877_v17 }
 0x5e7   :  { %1512 = vmatmul.mubr.msk.f32.gmra.mrb[10].mxu0 %vm301_vm9, %v878_v18 }
 0x6a7   :  { %v1510_v42 = vpop.f32.mrb[8].mxu0 }
 0x6a8   :  { %v995_v43 = vadd.f32 %v1510_v42, %v1275_v41  ;;  %v970_v44 = vpop.f32.mrb[9].mxu0 }
 0x6a9   :  { %v994_v45 = vadd.f32 %v1275_v41, %v970_v44 }
 0x6aa   :  { %v999_v46 = vmax.f32 %v995_v43, 0.0 }
 0x6ab   :  { %v998_v47 = vmax.f32 %v994_v45, 0.0 }
 0x6ac   :  { %v1008_v49 = vrot.slane %v999_v46, 4  ;;  %1040 = vrot.lane.b32.xlu0 %v999_v46, %s1675_s28 }
 0x6ad   :  { %v1006_v50 = vrot.slane %v998_v47, 4  ;;  %1038 = vrot.lane.b32.xlu1 %v998_v47, %s1675_s28 }
 0x6af   :  { %v1010_v51 = vsel %vm440_vm10, %v1006_v50, %v1008_v49  ;;  %v1012_v52 = vsel %vm440_vm10, %v1008_v49, %v1006_v50 }
 0x6b0   :  { %1024 = vrot.lane.b32.xlu0 %v1010_v51, %s1676_s29  ;;  %v1014_v53 = vsel %vm445_vm11, %v1012_v52, 0.0 }
 0x6b1   :  { %1022 = vrot.lane.b32.xlu1 %v1014_v53, %s1676_s29 }
 0x6ba   :  { %v1513_v22 = vpop.f32.mrb[10].mxu0 }
 0x6bb   :  { %v997_v23 = vadd.f32 %v1513_v22, %v1275_v41  ;;  %v980_v54 = vpop.f32.mrb[11].mxu0 }
 0x6bc   :  { %v996_v55 = vadd.f32 %v1275_v41, %v980_v54 }
 0x6bd   :  { %v1001_v56 = vmax.f32 %v997_v23, 0.0 }
 0x6be   :  { %v1000_v57 = vmax.f32 %v996_v55, 0.0 }
 0x6bf   :  { %v1009_v58 = vrot.slane %v1001_v56, 4 }
 0x6c0   :  { %v1007_v59 = vrot.slane %v1000_v57, 4 }
 0x6c2   :  { %v1011_v60 = vsel %vm440_vm10, %v1007_v59, %v1009_v58  ;;  %v1013_v62 = vsel %vm440_vm10, %v1009_v58, %v1007_v59 }
 0x6c3   :  { %1028 = vrot.lane.b32.xlu0 %v1011_v60, %s1676_s29  ;;  %v1016_v63 = vsel %vm445_vm11, %v1013_v62, 0.0 }
 0x6c4   :  { %1026 = vrot.lane.b32.xlu1 %v1016_v63, %s1676_s29 }
 0x6c7   :  { %1044 = vrot.lane.b32.xlu0 %v1001_v56, %s1675_s28 }
 0x6c8   :  { %1042 = vrot.lane.b32.xlu1 %v1000_v57, %s1675_s28 }
 0x71e   :  { %v1041_v0 = vpop.permute.xlu0 %1040 }
 0x71f   :  { %v1039_v1 = vpop.permute.xlu1 %1038 }
 0x722   :  { %v1025_v2 = vpop.permute.xlu0 %1024 }
 0x723   :  { %v1051_v3 = vsel %vm279_vm7, %v998_v47, %v1025_v2  ;;  %v1023_v39 = vpop.permute.xlu1 %1022 }
 0x724   :  { %v1050_v40 = vsel %vm279_vm7, 0.0, %v1023_v39  ;;  %v1055_v5 = vsel %vm284_vm8, %v1051_v3, %v1041_v0 }
 0x725   :  { %v1054_v4 = vsel %vm284_vm8, %v1050_v40, %v1039_v1 }
 0x726   :  { %1538 = vmatprep.mubr.msk.f32.mxu1 %vm301_vm9, %v1054_v4 }
 0x727   :  { %1539 = vmatmul.mubr.msk.f32.vlgmr.msra.gmra.mrb[8].mxu1 %vm301_vm9, %v1055_v5 }
 0x735   :  { %v1029_v6 = vpop.permute.xlu0 %1028 }
 0x736   :  { %v1027_v7 = vpop.permute.xlu1 %1026  ;;  %v1053_v11 = vsel %vm279_vm7, %v1000_v57, %v1029_v6 }
 0x737   :  { %v1052_v9 = vsel %vm279_vm7, 0.0, %v1027_v7 }
 0x739   :  { %v1045_v8 = vpop.permute.xlu0 %1044 }
 0x73a   :  { %v1043_v10 = vpop.permute.xlu1 %1042  ;;  %v1057_v13 = vsel %vm284_vm8, %v1053_v11, %v1045_v8 }
 0x73b   :  { %v1056_v12 = vsel %vm284_vm8, %v1052_v9, %v1043_v10 }
 0x73c   :  { %1541 = vmatprep.mubr.msk.f32.mxu1 %vm301_vm9, %v1056_v12 }
 0x73d   :  { %1542 = vmatmul.mubr.msk.f32.gmra.mrb[10].mxu1 %vm301_vm9, %v1057_v13 }
 0x7fa   :  { %v1540_v15 = vpop.f32.mrb[8].mxu1 }
 0x7fb   :  { %v1171_v16 = vadd.f32 %v1540_v15, %v1292_v14  ;;  %v1149_v17 = vpop.f32.mrb[9].mxu1 }
 0x7fd   :  { %v1173_v18 = vmax.f32 %v1171_v16, 0.0 }
 0x7ff   :  { %v1175_v19 = vadd.f32 %v1173_v18, %v2094_v48 }
 0x801   :  { %v1177_v21 = vmax.f32 %v1175_v19, 0.0 }
 0x803   :  { %v1184_v24 = vmul.f32 %v1293_v20, %v1177_v21 }
 0x805   :  { %v1192_v25 = vsel %vm1191_vm12, %v1184_v24, 0.0 }
 0x806   :  { %1193 = vadd.xlane.f32.xlu1 %v1192_v25 }
 0x810   :  { %v1543_v26 = vpop.f32.mrb[10].mxu1 }
 0x811   :  { %v1172_v27 = vadd.f32 %v1543_v26, %v1292_v14  ;;  %v1158_v28 = vpop.f32.mrb[11].mxu1 }
 0x813   :  { %v1174_v29 = vmax.f32 %v1172_v27, 0.0 }
 0x815   :  { %v1176_v30 = vadd.f32 %v1174_v29, %v2110_v61 }
 0x817   :  { %v1178_v31 = vmax.f32 %v1176_v30, 0.0 }
 0x819   :  { %v1185_v32 = vmul.f32 %v1293_v20, %v1178_v31 }
 0x81b   :  { %v1188_v33 = vrot.slane %v1185_v32, 7 }
 0x81d   :  { %v1196_v48 = vsel %vm1195_vm13, %v1188_v33, 0.0 }
 0x81e   :  { %1197 = vadd.xlane.f32.xlu0 %v1196_v48 }
 0x893   :  { %v1194_v35 = vpop.xlane.xlu1 %1193 }
 0x894   :  { %v1204_v36 = vadd.f32 %v1294_v34, %v1194_v35 }
 0x896   :  { %1207 = vst.msk [vmem:[%s2228_s4 - $0x7] sm:$0x80] %vm1206_vm14, %v1204_v36 }
 0x8ab   :  { %v1198_v37 = vpop.xlane.xlu0 %1197 }
 0x8ac   :  { %v1205_v61 = vadd.f32 %v1294_v34, %v1198_v37 }
 0x8ae   :  { %1209 = vst.msk [vmem:[%s2228_s4 + $0x1] sm:$0x1] %vm1208_vm15, %v1205_v61 }

</bundles_post_ra>
